<compile_context>
chip_gen: v6e
topology: v6e:2x2x1
jax: 0.10.0
libtpu: 0.0.40
codegen_flags: <defaults>
</compile_context>

<pallas_src>
import functools

import jax
import jax.numpy as jnp
from jax import lax
from jax.experimental import pallas as pl
from jax.experimental.pallas import tpu as pltpu

EMBEDDING_DIM = 128
HIDDEN_DIM = 256
NUM_CLASS = 2
VOCAB_SIZE = 64

LANE = 128
MAX_BAG_BLOCK = 128      # bags (output rows) per grid step
MAX_TOKEN_BLOCK = 2048   # token-axis tile; keeps VMEM use independent of T


def _round_up(x, m):
    return (x + m - 1) // m * m


def fused_mlp_kernel(num_class, starts_ref, ends_ref, tok_emb_ref,
                     w1_ref, b1_ref, w2_ref, b2_ref, out_ref, acc_ref):
    """grid = (bag blocks, token blocks); token axis is a reduction.

    acc_ref accumulates the per-bag embedding sum across token chunks; the
    MLP head + log_softmax run once, on the last token step.
    """
    k = pl.program_id(1)
    tk = tok_emb_ref.shape[0]

    @pl.when(k == 0)
    def _():
        acc_ref[...] = jnp.zeros_like(acc_ref)

    starts = starts_ref[...]                               # (BB, 1) int32
    ends = ends_ref[...]                                   # (BB, 1) int32

    # Bag membership over this chunk's *global* token positions.  Padded
    # token slots (>= total_tokens) never fall inside any bag's [start, end).
    t_idx = lax.broadcasted_iota(jnp.int32, (1, tk), 1) + k * tk
    membership = ((t_idx >= starts) & (t_idx < ends)).astype(jnp.float32)

    # Partial per-bag embedding sum on the MXU: (BB, TK) @ (TK, 128).
    acc_ref[...] += jnp.dot(membership, tok_emb_ref[...],
                            preferred_element_type=jnp.float32)

    @pl.when(k == pl.num_programs(1) - 1)
    def _():
        # Bag mean (empty/padded bags -> 0; exact divide, no approx recip).
        len_f = (ends - starts).astype(jnp.float32)
        inv_len = jnp.where(len_f > 0.0, 1.0 / jnp.maximum(len_f, 1.0), 0.0)
        x = acc_ref[...] * inv_len                          # (BB, EMB)

        # Linear -> ReLU -> Linear (class dim padded to 128 lanes).
        h = (jnp.dot(x, w1_ref[...], preferred_element_type=jnp.float32)
             + b1_ref[...])
        h = jnp.maximum(h, 0.0)
        logits = (jnp.dot(h, w2_ref[...], preferred_element_type=jnp.float32)
                  + b2_ref[...])                            # (BB, CLASS_PAD)

        # log_softmax over the valid classes only (mask padded lanes).
        c_idx = lax.broadcasted_iota(jnp.int32, logits.shape, 1)
        logits = jnp.where(c_idx < num_class, logits, jnp.float32(-1e30))
        m = jnp.max(logits, axis=-1, keepdims=True)
        z = logits - m
        lse = jnp.log(jnp.sum(jnp.exp(z), axis=-1, keepdims=True))
        out_ref[...] = z - lse


@jax.jit
def mlp_forward(tokens, offsets, emb_table, w1, b1, w2, b2):
    """EmbeddingBag(mean) -> Linear -> ReLU -> Linear -> log_softmax."""
    total_tokens = tokens.shape[0]
    num_bags = offsets.shape[0]

    # --- Bag (output-row) blocking: sublane/MXU aligned.  Keep >= 2 grid
    # steps on the parallel axis when possible so v7x's 2 TCs both get work.
    bag_block = min(MAX_BAG_BLOCK, _round_up(num_bags, 8))
    if bag_block > 8 and _round_up(num_bags, bag_block) == bag_block:
        bag_block = _round_up(bag_block // 2, 8)
    nb_pad = _round_up(num_bags, bag_block)

    # --- Token-axis blocking: VMEM use independent of T.
    t_pad = _round_up(total_tokens, LANE)
    token_block = min(MAX_TOKEN_BLOCK, t_pad)
    t_pad = _round_up(t_pad, token_block)

    class_pad = _round_up(NUM_CLASS, LANE)

    # Per-bag [start, end) over the flat token stream; padded bags are empty.
    offs_ext = jnp.full((nb_pad + 1,), total_tokens, dtype=jnp.int32)
    offs_ext = offs_ext.at[:num_bags].set(offsets.astype(jnp.int32))
    starts = offs_ext[:nb_pad].reshape(nb_pad, 1)
    ends = offs_ext[1:nb_pad + 1].reshape(nb_pad, 1)

    # Hoisted embedding gather (re-associated reduction): kernel only sees the
    # already-gathered (T_PAD, 128) token embeddings.  Padded token rows use
    # id 0 but are excluded by the membership mask, so they contribute nothing.
    toks_pad = jnp.zeros((t_pad,), dtype=jnp.int32)
    toks_pad = toks_pad.at[:total_tokens].set(tokens.astype(jnp.int32))
    tok_emb = jnp.take(emb_table, toks_pad, axis=0)         # (T_PAD, 128) f32

    # Lane-dense class dim so the output store is an unmasked full-lane vst.
    w2_pad = jnp.zeros((HIDDEN_DIM, class_pad), jnp.float32)
    w2_pad = w2_pad.at[:, :NUM_CLASS].set(w2)
    b2_pad = jnp.zeros((1, class_pad), jnp.float32)
    b2_pad = b2_pad.at[:, :NUM_CLASS].set(b2)

    kernel = functools.partial(fused_mlp_kernel, NUM_CLASS)

    out = pl.pallas_call(
        kernel,
        out_shape=jax.ShapeDtypeStruct((nb_pad, class_pad), jnp.float32),
        grid_spec=pltpu.PrefetchScalarGridSpec(
            num_scalar_prefetch=0,
            grid=(nb_pad // bag_block, t_pad // token_block),
            in_specs=[
                pl.BlockSpec((bag_block, 1), lambda i, k: (i, 0)),   # starts
                pl.BlockSpec((bag_block, 1), lambda i, k: (i, 0)),   # ends
                pl.BlockSpec((token_block, EMBEDDING_DIM),
                             lambda i, k: (k, 0)),                   # tok_emb
                pl.BlockSpec((EMBEDDING_DIM, HIDDEN_DIM),
                             lambda i, k: (0, 0)),                   # w1
                pl.BlockSpec((1, HIDDEN_DIM), lambda i, k: (0, 0)),  # b1
                pl.BlockSpec((HIDDEN_DIM, class_pad),
                             lambda i, k: (0, 0)),                   # w2
                pl.BlockSpec((1, class_pad), lambda i, k: (0, 0)),   # b2
            ],
            out_specs=pl.BlockSpec((bag_block, class_pad),
                                   lambda i, k: (i, 0)),
            scratch_shapes=[
                pltpu.VMEM((bag_block, EMBEDDING_DIM), jnp.float32)],
        ),
        compiler_params=pltpu.CompilerParams(
            dimension_semantics=("parallel", "arbitrary"),
            vmem_limit_bytes=32 * 1024 * 1024),
    )(starts, ends, tok_emb, w1, b1, w2_pad, b2_pad)

    return out[:num_bags, :NUM_CLASS]


def init_params(key):
    k0, k1, k2, k3, k4 = jax.random.split(key, 5)
    emb_table = jax.random.normal(k0, (VOCAB_SIZE, EMBEDDING_DIM),
                                  dtype=jnp.float32)
    # nn.Linear-like uniform init, stored transposed (in, out).
    lim1 = 1.0 / (EMBEDDING_DIM ** 0.5)
    w1 = jax.random.uniform(k1, (EMBEDDING_DIM, HIDDEN_DIM),
                            minval=-lim1, maxval=lim1, dtype=jnp.float32)
    b1 = jax.random.uniform(k2, (1, HIDDEN_DIM),
                            minval=-lim1, maxval=lim1, dtype=jnp.float32)
    lim2 = 1.0 / (HIDDEN_DIM ** 0.5)
    w2 = jax.random.uniform(k3, (HIDDEN_DIM, NUM_CLASS),
                            minval=-lim2, maxval=lim2, dtype=jnp.float32)
    b2 = jax.random.uniform(k4, (1, NUM_CLASS),
                            minval=-lim2, maxval=lim2, dtype=jnp.float32)
    return emb_table, w1, b1, w2, b2


if __name__ == "__main__":
    key = jax.random.PRNGKey(0)
    pkey, tkey = jax.random.split(key)
    emb_table, w1, b1, w2, b2 = init_params(pkey)

    # 4 bags over 16 flat tokens (PyTorch EmbeddingBag-style 1D input).
    tokens = jax.random.randint(tkey, (16,), 0, VOCAB_SIZE, dtype=jnp.int32)
    offsets = jnp.array([0, 3, 7, 12], dtype=jnp.int32)

    log_probs = mlp_forward(tokens, offsets, emb_table, w1, b1, w2, b2)
    jax.block_until_ready(log_probs)

    assert log_probs.shape == (offsets.shape[0], NUM_CLASS)
    # rows of log_softmax must exponentiate-and-sum to 1
    assert bool(jnp.allclose(jnp.sum(jnp.exp(log_probs), axis=1), 1.0,
                             atol=1e-5))

    # Pure-JAX reference (EmbeddingBag mean -> MLP -> log_softmax).
    offs_list = [int(v) for v in offsets]
    ends_list = offs_list[1:] + [int(tokens.shape[0])]
    means = [jnp.mean(emb_table[tokens[s:e]], axis=0)
             for s, e in zip(offs_list, ends_list)]
    x_ref = jnp.stack(means)
    h_ref = jnp.maximum(x_ref @ w1 + b1, 0.0)
    ref = jax.nn.log_softmax(h_ref @ w2 + b2, axis=-1)
    assert bool(jnp.allclose(log_probs, ref, atol=1e-4, rtol=1e-4))

    print("KERNEL_OK")
</pallas_src>

<mosaic_0001>
module attributes {stable_mosaic.version = 11 : i64} {
  func.func @fused_mlp_kernel(%arg0: i32, %arg1: i32, %arg2: memref<8x1xi32, #tpu.memory_space<vmem>>, %arg3: memref<8x1xi32, #tpu.memory_space<vmem>>, %arg4: memref<128x128xf32, #tpu.memory_space<vmem>>, %arg5: memref<128x256xf32, #tpu.memory_space<vmem>>, %arg6: memref<1x256xf32, #tpu.memory_space<vmem>>, %arg7: memref<256x128xf32, #tpu.memory_space<vmem>>, %arg8: memref<1x128xf32, #tpu.memory_space<vmem>>, %arg9: memref<8x128xf32, #tpu.memory_space<vmem>>, %arg10: memref<8x128xf32, #tpu.memory_space<vmem>>) attributes {dimension_semantics = [#tpu.dimension_semantics<parallel>, #tpu.dimension_semantics<arbitrary>], iteration_bounds = array<i64: 1, 1>, scalar_prefetch = 0 : i64, scratch_operands = 1 : i64, tpu.core_type = #tpu.core_type<tc>, window_params = [{transform_indices = @transform_0, window_bounds = array<i64: 8, 1>}, {transform_indices = @transform_1, window_bounds = array<i64: 8, 1>}, {transform_indices = @transform_2, window_bounds = array<i64: 128, 128>}, {pipeline_mode = #tpu.pipeline_mode<synchronous>, transform_indices = @transform_3, window_bounds = array<i64: 128, 256>}, {pipeline_mode = #tpu.pipeline_mode<synchronous>, transform_indices = @transform_4, window_bounds = array<i64: 1, 256>}, {pipeline_mode = #tpu.pipeline_mode<synchronous>, transform_indices = @transform_5, window_bounds = array<i64: 256, 128>}, {pipeline_mode = #tpu.pipeline_mode<synchronous>, transform_indices = @transform_6, window_bounds = array<i64: 1, 128>}, {transform_indices = @transform_7, window_bounds = array<i64: 8, 128>}]} {
    %c0_i32 = arith.constant 0 : i32
    %0 = arith.cmpi eq, %arg1, %c0_i32 : i32
    %1 = arith.extui %0 : i1 to i32
    %c0_i32_0 = arith.constant 0 : i32
    %2 = arith.cmpi ne, %1, %c0_i32_0 : i32
    scf.if %2 {
      %cst_12 = arith.constant 0.000000e+00 : f32
      %26 = vector.broadcast %cst_12 : f32 to vector<8x128xf32>
      %c0_13 = arith.constant 0 : index
      %c0_14 = arith.constant 0 : index
      %27 = vector.load %arg10[%c0_13, %c0_14] : memref<8x128xf32, #tpu.memory_space<vmem>>, vector<8x128xf32>
      tpu.vector_store %arg10[%c0_13, %c0_14], %26 {strides = array<i32>} : memref<8x128xf32, #tpu.memory_space<vmem>>, vector<8x128xf32>,
    } else {
    }
    %c0 = arith.constant 0 : index
    %c0_1 = arith.constant 0 : index
    %3 = vector.load %arg2[%c0, %c0_1] : memref<8x1xi32, #tpu.memory_space<vmem>>, vector<8x1xi32>
    %c0_2 = arith.constant 0 : index
    %c0_3 = arith.constant 0 : index
    %4 = vector.load %arg3[%c0_2, %c0_3] : memref<8x1xi32, #tpu.memory_space<vmem>>, vector<8x1xi32>
    %5 = tpu.iota {dimensions = array<i32: 1>} : vector<1x128xi32>
    %c128_i32 = arith.constant 128 : i32
    %6 = arith.muli %arg1, %c128_i32 : i32
    %7 = vector.broadcast %6 : i32 to vector<1x128xi32>
    %8 = arith.addi %5, %7 : vector<1x128xi32>
    %9 = vector.broadcast %8 : vector<1x128xi32> to vector<8x128xi32>
    %10 = vector.broadcast %3 : vector<8x1xi32> to vector<8x128xi32>
    %11 = arith.cmpi sge, %9, %10 : vector<8x128xi32>
    %12 = vector.broadcast %8 : vector<1x128xi32> to vector<8x128xi32>
    %13 = vector.broadcast %4 : vector<8x1xi32> to vector<8x128xi32>
    %14 = arith.cmpi slt, %12, %13 : vector<8x128xi32>
    %15 = arith.andi %11, %14 : vector<8x128xi1>
    %16 = arith.extui %15 : vector<8x128xi1> to vector<8x128xi32>
    %17 = arith.sitofp %16 : vector<8x128xi32> to vector<8x128xf32>
    %c0_4 = arith.constant 0 : index
    %c0_5 = arith.constant 0 : index
    %18 = vector.load %arg10[%c0_4, %c0_5] : memref<8x128xf32, #tpu.memory_space<vmem>>, vector<8x128xf32>
    %c0_6 = arith.constant 0 : index
    %c0_7 = arith.constant 0 : index
    %19 = vector.load %arg4[%c0_6, %c0_7] : memref<128x128xf32, #tpu.memory_space<vmem>>, vector<128x128xf32>
    %cst = arith.constant dense<0.000000e+00> : vector<8x128xf32>
    %20 = tpu.matmul %17, %19, %cst {dimension_numbers = #tpu.dot_dimension_numbers<[1], [0], [0], [1], [0, 0, 1, 1], [], []>} : vector<8x128xf32>, vector<128x128xf32>, vector<8x128xf32> -> vector<8x128xf32>
    %21 = arith.addf %18, %20 : vector<8x128xf32>
    %c0_8 = arith.constant 0 : index
    %c0_9 = arith.constant 0 : index
    %22 = vector.load %arg10[%c0_8, %c0_9] : memref<8x128xf32, #tpu.memory_space<vmem>>, vector<8x128xf32>
    tpu.vector_store %arg10[%c0_8, %c0_9], %21 {strides = array<i32>} : memref<8x128xf32, #tpu.memory_space<vmem>>, vector<8x128xf32>,
    %c0_i32_10 = arith.constant 0 : i32
    %23 = arith.cmpi eq, %arg1, %c0_i32_10 : i32
    %24 = arith.extui %23 : i1 to i32
    %c0_i32_11 = arith.constant 0 : i32
    %25 = arith.cmpi ne, %24, %c0_i32_11 : i32
    scf.if %25 {
      %26 = arith.subi %4, %3 : vector<8x1xi32>
      %27 = arith.sitofp %26 : vector<8x1xi32> to vector<8x1xf32>
      %cst_12 = arith.constant 0.000000e+00 : f32
      %28 = vector.broadcast %cst_12 : f32 to vector<8x1xf32>
      %29 = arith.cmpf ogt, %27, %28 : vector<8x1xf32>
      %cst_13 = arith.constant 1.000000e+00 : f32
      %30 = vector.broadcast %cst_13 : f32 to vector<8x1xf32>
      %31 = arith.maximumf %27, %30 : vector<8x1xf32>
      %cst_14 = arith.constant 1.000000e+00 : f32
      %32 = vector.broadcast %cst_14 : f32 to vector<8x1xf32>
      %33 = arith.divf %32, %31 : vector<8x1xf32>
      %cst_15 = arith.constant 0.000000e+00 : f32
      %34 = vector.broadcast %cst_15 : f32 to vector<8x1xf32>
      %35 = arith.select %29, %33, %34 : vector<8x1xi1>, vector<8x1xf32>
      %c0_16 = arith.constant 0 : index
      %c0_17 = arith.constant 0 : index
      %36 = vector.load %arg10[%c0_16, %c0_17] : memref<8x128xf32, #tpu.memory_space<vmem>>, vector<8x128xf32>
      %37 = vector.broadcast %35 : vector<8x1xf32> to vector<8x128xf32>
      %38 = arith.mulf %36, %37 : vector<8x128xf32>
      %c0_18 = arith.constant 0 : index
      %c0_19 = arith.constant 0 : index
      %39 = vector.load %arg5[%c0_18, %c0_19] : memref<128x256xf32, #tpu.memory_space<vmem>>, vector<128x256xf32>
      %cst_20 = arith.constant dense<0.000000e+00> : vector<8x256xf32>
      %40 = tpu.matmul %38, %39, %cst_20 {dimension_numbers = #tpu.dot_dimension_numbers<[1], [0], [0], [1], [0, 0, 1, 1], [], []>} : vector<8x128xf32>, vector<128x256xf32>, vector<8x256xf32> -> vector<8x256xf32>
      %c0_21 = arith.constant 0 : index
      %c0_22 = arith.constant 0 : index
      %41 = vector.load %arg6[%c0_21, %c0_22] : memref<1x256xf32, #tpu.memory_space<vmem>>, vector<1x256xf32>
      %42 = vector.broadcast %41 : vector<1x256xf32> to vector<8x256xf32>
      %43 = arith.addf %40, %42 : vector<8x256xf32>
      %cst_23 = arith.constant 0.000000e+00 : f32
      %44 = vector.broadcast %cst_23 : f32 to vector<8x256xf32>
      %45 = arith.maximumf %43, %44 : vector<8x256xf32>
      %c0_24 = arith.constant 0 : index
      %c0_25 = arith.constant 0 : index
      %46 = vector.load %arg7[%c0_24, %c0_25] : memref<256x128xf32, #tpu.memory_space<vmem>>, vector<256x128xf32>
      %cst_26 = arith.constant dense<0.000000e+00> : vector<8x128xf32>
      %47 = tpu.matmul %45, %46, %cst_26 {dimension_numbers = #tpu.dot_dimension_numbers<[1], [0], [0], [1], [0, 0, 1, 1], [], []>} : vector<8x256xf32>, vector<256x128xf32>, vector<8x128xf32> -> vector<8x128xf32>
      %c0_27 = arith.constant 0 : index
      %c0_28 = arith.constant 0 : index
      %48 = vector.load %arg8[%c0_27, %c0_28] : memref<1x128xf32, #tpu.memory_space<vmem>>, vector<1x128xf32>
      %49 = vector.broadcast %48 : vector<1x128xf32> to vector<8x128xf32>
      %50 = arith.addf %47, %49 : vector<8x128xf32>
      %51 = tpu.iota {dimensions = array<i32: 1>} : vector<8x128xi32>
      %c2_i32 = arith.constant 2 : i32
      %52 = vector.broadcast %c2_i32 : i32 to vector<8x128xi32>
      %53 = arith.cmpi slt, %51, %52 : vector<8x128xi32>
      %cst_29 = arith.constant -1.000000e+30 : f32
      %54 = vector.broadcast %cst_29 : f32 to vector<8x128xf32>
      %55 = arith.select %53, %50, %54 : vector<8x128xi1>, vector<8x128xf32>
      %cst_30 = arith.constant dense<0xFF800000> : vector<8xf32>
      %56 = vector.multi_reduction <maximumf>, %55, %cst_30 [1] : vector<8x128xf32> to vector<8xf32>
      %57 = vector.shape_cast %56 : vector<8xf32> to vector<8x1xf32>
      %58 = vector.broadcast %57 : vector<8x1xf32> to vector<8x128xf32>
      %59 = arith.subf %55, %58 : vector<8x128xf32>
      %60 = math.exp %59 : vector<8x128xf32>
      %cst_31 = arith.constant dense<0.000000e+00> : vector<8xf32>
      %61 = vector.multi_reduction <add>, %60, %cst_31 [1] : vector<8x128xf32> to vector<8xf32>
      %62 = vector.shape_cast %61 : vector<8xf32> to vector<8x1xf32>
      %63 = math.log %62 : vector<8x1xf32>
      %64 = vector.broadcast %63 : vector<8x1xf32> to vector<8x128xf32>
      %65 = arith.subf %59, %64 : vector<8x128xf32>
      %c0_32 = arith.constant 0 : index
      %c0_33 = arith.constant 0 : index
      %66 = vector.load %arg9[%c0_32, %c0_33] : memref<8x128xf32, #tpu.memory_space<vmem>>, vector<8x128xf32>
      tpu.vector_store %arg9[%c0_32, %c0_33], %65 {strides = array<i32>} : memref<8x128xf32, #tpu.memory_space<vmem>>, vector<8x128xf32>,
    } else {
    }
    return
  }
  func.func @transform_0(%arg0: i32, %arg1: i32) -> (i32, i32) {
    %c0_i32 = arith.constant 0 : i32
    %c0_i32_0 = arith.constant 0 : i32
    return %arg0, %c0_i32 : i32, i32
  }
  func.func @transform_1(%arg0: i32, %arg1: i32) -> (i32, i32) {
    %c0_i32 = arith.constant 0 : i32
    %c0_i32_0 = arith.constant 0 : i32
    return %arg0, %c0_i32 : i32, i32
  }
  func.func @transform_2(%arg0: i32, %arg1: i32) -> (i32, i32) {
    %c0_i32 = arith.constant 0 : i32
    %c0_i32_0 = arith.constant 0 : i32
    return %arg1, %c0_i32 : i32, i32
  }
  func.func @transform_3(%arg0: i32, %arg1: i32) -> (i32, i32) {
    %c0_i32 = arith.constant 0 : i32
    %c0_i32_0 = arith.constant 0 : i32
    %c0_i32_1 = arith.constant 0 : i32
    return %c0_i32, %c0_i32_0 : i32, i32
  }
  func.func @transform_4(%arg0: i32, %arg1: i32) -> (i32, i32) {
    %c0_i32 = arith.constant 0 : i32
    %c0_i32_0 = arith.constant 0 : i32
    %c0_i32_1 = arith.constant 0 : i32
    return %c0_i32, %c0_i32_0 : i32, i32
  }
  func.func @transform_5(%arg0: i32, %arg1: i32) -> (i32, i32) {
    %c0_i32 = arith.constant 0 : i32
    %c0_i32_0 = arith.constant 0 : i32
    %c0_i32_1 = arith.constant 0 : i32
    return %c0_i32, %c0_i32_0 : i32, i32
  }
  func.func @transform_6(%arg0: i32, %arg1: i32) -> (i32, i32) {
    %c0_i32 = arith.constant 0 : i32
    %c0_i32_0 = arith.constant 0 : i32
    %c0_i32_1 = arith.constant 0 : i32
    return %c0_i32, %c0_i32_0 : i32, i32
  }
  func.func @transform_7(%arg0: i32, %arg1: i32) -> (i32, i32) {
    %c0_i32 = arith.constant 0 : i32
    %c0_i32_0 = arith.constant 0 : i32
    return %arg0, %c0_i32 : i32, i32
  }
}

</mosaic_0001>

<bundles_post_ra>
// kernel: mlp_forward.1
= control target key start
LH: loop header
LB: loop body
LE: loop exit
PB: predicated region body
PF: predicated region fallthrough
CT: control target
= control target key end

     0   :  { %v500_v0 = vmov 0   ;;  %v501_v3 = vmov 0.0   ;;  %vm502_vm0 = vmmov 0   ;;  %v33_v54 = vlaneseq  ;;  %s828_s0 = inlined_call_operand.vmem [shape: s32[8,1], index: 0, kind: input, shape index: {}]   ;;  %s829_s1 = inlined_call_operand.vmem [shape: s32[8,1], index: 1, kind: input, shape index: {}]   ;;  %s830_s2 = inlined_call_operand.vmem [shape: f32[128,128], index: 2, kind: input, shape index: {}]   ;;  %s831_s3 = inlined_call_operand.vmem [shape: f32[128,256], index: 3, kind: input, shape index: {}]   ;;  %s832_s5 = inlined_call_operand.vmem [shape: f32[256,128], index: 5, kind: input, shape index: {}]   ;;  %s833_s4 = inlined_call_operand.vmem [shape: f32[1,256], index: 4, kind: input, shape index: {}]   ;;  %s834_s6 = inlined_call_operand.vmem [shape: f32[1,128], index: 6, kind: input, shape index: {}]   ;;  %s835_s7 = inlined_call_operand.vmem [shape: f32[8,128], index: 7, kind: output, shape index: {}]  }
   0x1   :  { %492 = vset.pattern.permute.xlu0 %v500_v0  ;;  %v31_v1 = vld [vmem:[%s828_s0] sm:$0xff]  ;;  %453 = vmatprep.subr.mxu0 %v501_v3  ;;  %v65_v4 = vld [vmem:[%s830_s2 + $0x78] sm:$0xff]  ;;  %v64_v6 = vld [vmem:[%s830_s2 + $0x70] sm:$0xff]  ;;  %v503_v58 = vmov 1.0  }
   0x2   :  { %v32_v2 = vld [vmem:[%s829_s1] sm:$0xff]  ;;  %39 = vperm.xlu0 %492, %v31_v1   ;;  %454 = vmatpush3.msra.mxu0 %v65_v4  ;;  %v63_v7 = vld [vmem:[%s830_s2 + $0x68] sm:$0xff]  ;;  %v61_v11 = vld [vmem:[%s830_s2 + $0x58] sm:$0xff]  ;;  %v708_v56 = vand.u32 127, %v33_v54 }
   0x3   :  { %v141_v5 = vsub.s32 %v32_v2, %v31_v1  ;;  %455 = vmatprep.subr.mxu0 %v501_v3  ;;  %485 = vmatprep.mubr.msk.f32.mxu0 %vm502_vm0, %v501_v3  ;;  %v62_v9 = vld [vmem:[%s830_s2 + $0x60] sm:$0xff]  ;;  %v186_v12 = vld [vmem:[%s831_s3 + $0xf8] sm:$0xff]  ;;  %v185_v13 = vld [vmem:[%s831_s3 + $0xf0] sm:$0xff] }
   0x4   :  { %456 = vmatpush3.msra.mxu0 %v64_v6  ;;  %493 = vset.pattern.permute.xlu1 %v500_v0  ;;  %v184_v14 = vld [vmem:[%s831_s3 + $0xe8] sm:$0xff]  ;;  %v183_v15 = vld [vmem:[%s831_s3 + $0xe0] sm:$0xff]  ;;  %v60_v16 = vld [vmem:[%s830_s2 + $0x50] sm:$0xff]  ;;  %vm381_vm5 = vcmp.lt.s32.totalorder %v708_v56, 2 }
   0x5   :  { %v562_v8 = vcvt.s32.f32 %v141_v5  ;;  %457 = vmatprep.subr.mxu0 %v501_v3  ;;  %263 = vmatprep.mubr.f32.mxu1 %v501_v3  ;;  %v182_v17 = vld [vmem:[%s831_s3 + $0xd8] sm:$0xff]  ;;  %v181_v18 = vld [vmem:[%s831_s3 + $0xd0] sm:$0xff]  ;;  %v59_v19 = vld [vmem:[%s830_s2 + $0x48] sm:$0xff] }
   0x6   :  { %43 = vperm.xlu0 %492, %v32_v2   ;;  %458 = vmatpush3.msra.mxu0 %v63_v7  ;;  %v180_v20 = vld [vmem:[%s831_s3 + $0xc8] sm:$0xff]  ;;  %v179_v21 = vld [vmem:[%s831_s3 + $0xc0] sm:$0xff]  ;;  %v178_v23 = vld [vmem:[%s831_s3 + $0xb8] sm:$0xff] }
   0x7   :  { %v144_v10 = vmax.f32 %v562_v8, 1.0  ;;  %459 = vmatprep.subr.mxu0 %v501_v3  ;;  %199 = vmatprep.subr.mxu1 %v186_v12  ;;  %v58_v22 = vld [vmem:[%s830_s2 + $0x40] sm:$0xff]  ;;  %v177_v24 = vld [vmem:[%s831_s3 + $0xb0] sm:$0xff]  ;;  %v57_v25 = vld [vmem:[%s830_s2 + $0x38] sm:$0xff]  ;;  %vm143_vm1 = vcmp.gt.f32.partialorder %v562_v8, 0.0 }
   0x8   :  { %460 = vmatpush3.msra.mxu0 %v62_v9  ;;  %200 = vmatpush1.msra.mxu1 %v185_v13  ;;  %v176_v26 = vld [vmem:[%s831_s3 + $0xa8] sm:$0xff]  ;;  %v175_v27 = vld [vmem:[%s831_s3 + $0xa0] sm:$0xff]  ;;  %v56_v28 = vld [vmem:[%s830_s2 + $0x30] sm:$0xff] }
   0x9   :  { %494 = vrcp.f32 %v144_v10  ;;  %461 = vmatprep.subr.mxu0 %v501_v3  ;;  %201 = vmatprep.subr.mxu1 %v184_v14  ;;  %v174_v29 = vld [vmem:[%s831_s3 + $0x98] sm:$0xff]  ;;  %v173_v30 = vld [vmem:[%s831_s3 + $0x90] sm:$0xff]  ;;  %v55_v31 = vld [vmem:[%s830_s2 + $0x28] sm:$0xff] }
   0xa   :  { %462 = vmatpush3.msra.mxu0 %v61_v11  ;;  %202 = vmatpush1.msra.mxu1 %v183_v15  ;;  %v172_v32 = vld [vmem:[%s831_s3 + $0x88] sm:$0xff]  ;;  %v54_v34 = vld [vmem:[%s830_s2 + $0x20] sm:$0xff]  ;;  %v170_v37 = vld [vmem:[%s831_s3 + $0x78] sm:$0xff] }
   0xb   :  { %463 = vmatprep.subr.mxu0 %v501_v3  ;;  %203 = vmatprep.subr.mxu1 %v182_v17  ;;  %v171_v35 = vld [vmem:[%s831_s3 + $0x80] sm:$0xff]  ;;  %v53_v38 = vld [vmem:[%s830_s2 + $0x18] sm:$0xff]  ;;  %v169_v39 = vld [vmem:[%s831_s3 + $0x70] sm:$0xff] }
   0xc   :  { %464 = vmatpush3.msra.mxu0 %v60_v16  ;;  %204 = vmatpush1.msra.mxu1 %v181_v18  ;;  %v168_v40 = vld [vmem:[%s831_s3 + $0x68] sm:$0xff]  ;;  %v52_v41 = vld [vmem:[%s830_s2 + $0x10] sm:$0xff]  ;;  %v167_v42 = vld [vmem:[%s831_s3 + $0x60] sm:$0xff] }
   0xd   :  { %465 = vmatprep.subr.mxu0 %v501_v3  ;;  %205 = vmatprep.subr.mxu1 %v180_v20  ;;  %v166_v43 = vld [vmem:[%s831_s3 + $0x58] sm:$0xff]  ;;  %v51_v44 = vld [vmem:[%s830_s2 + $0x8] sm:$0xff]  ;;  %v165_v45 = vld [vmem:[%s831_s3 + $0x50] sm:$0xff] }
   0xe   :  { %466 = vmatpush3.msra.mxu0 %v59_v19  ;;  %206 = vmatpush1.msra.mxu1 %v179_v21  ;;  %v164_v46 = vld [vmem:[%s831_s3 + $0x48] sm:$0xff]  ;;  %v50_v47 = vld [vmem:[%s830_s2] sm:$0xff]  ;;  %v162_v49 = vld [vmem:[%s831_s3 + $0x38] sm:$0xff] }
   0xf   :  { %467 = vmatprep.subr.mxu0 %v501_v3  ;;  %207 = vmatprep.subr.mxu1 %v178_v23  ;;  %v163_v48 = vld [vmem:[%s831_s3 + $0x40] sm:$0xff]  ;;  %v161_v50 = vld [vmem:[%s831_s3 + $0x30] sm:$0xff]  ;;  %v160_v51 = vld [vmem:[%s831_s3 + $0x28] sm:$0xff] }
  0x10   :  { %468 = vmatpush3.msra.mxu0 %v58_v22  ;;  %208 = vmatpush1.msra.mxu1 %v177_v24  ;;  %v159_v52 = vld [vmem:[%s831_s3 + $0x20] sm:$0xff]  ;;  %v158_v53 = vld [vmem:[%s831_s3 + $0x18] sm:$0xff]  ;;  %v157_v59 = vld [vmem:[%s831_s3 + $0x10] sm:$0xff] }
  0x11   :  { %469 = vmatprep.subr.mxu0 %v501_v3  ;;  %209 = vmatprep.subr.mxu1 %v176_v26  ;;  %v156_v60 = vld [vmem:[%s831_s3 + $0x8] sm:$0xff]  ;;  %v155_v61 = vld [vmem:[%s831_s3] sm:$0xff]  ;;  %v303_v62 = vld [vmem:[%s832_s5 + $0xf8] sm:$0xff] }
  0x12   :  { %470 = vmatpush3.msra.mxu0 %v57_v25  ;;  %210 = vmatpush1.msra.mxu1 %v175_v27  ;;  %v287_v63 = vld [vmem:[%s832_s5 + $0x78] sm:$0xff]  ;;  %v302_v0 = vld [vmem:[%s832_s5 + $0xf0] sm:$0xff]  ;;  %v301_v2 = vld [vmem:[%s832_s5 + $0xe8] sm:$0xff] }
  0x13   :  { %471 = vmatprep.subr.mxu0 %v501_v3  ;;  %211 = vmatprep.subr.mxu1 %v174_v29  ;;  %v286_v1 = vld [vmem:[%s832_s5 + $0x70] sm:$0xff]  ;;  %v300_v4 = vld [vmem:[%s832_s5 + $0xe0] sm:$0xff]  ;;  %v299_v6 = vld [vmem:[%s832_s5 + $0xd8] sm:$0xff] }
  0x14   :  { %472 = vmatpush3.msra.mxu0 %v56_v28  ;;  %212 = vmatpush1.msra.mxu1 %v173_v30  ;;  %v284_v5 = vld [vmem:[%s832_s5 + $0x60] sm:$0xff]  ;;  %v283_v7 = vld [vmem:[%s832_s5 + $0x58] sm:$0xff]  ;;  %v298_v8 = vld [vmem:[%s832_s5 + $0xd0] sm:$0xff] }
  0x15   :  { %473 = vmatprep.subr.mxu0 %v501_v3  ;;  %213 = vmatprep.subr.mxu1 %v172_v32  ;;  %v282_v9 = vld [vmem:[%s832_s5 + $0x50] sm:$0xff]  ;;  %v297_v10 = vld [vmem:[%s832_s5 + $0xc8] sm:$0xff]  ;;  %v296_v12 = vld [vmem:[%s832_s5 + $0xc0] sm:$0xff] }
  0x16   :  { %v495_v33 = vpop.eup %494  ;;  %474 = vmatpush3.msra.mxu0 %v55_v31  ;;  %214 = vmatpush1.msra.mxu1 %v171_v35  ;;  %v281_v11 = vld [vmem:[%s832_s5 + $0x48] sm:$0xff]  ;;  %v280_v13 = vld [vmem:[%s832_s5 + $0x40] sm:$0xff]  ;;  %v295_v14 = vld [vmem:[%s832_s5 + $0xb8] sm:$0xff] }
  0x17   :  { %v147_v36 = vsel %vm143_vm1, %v495_v33, 0.0  ;;  %475 = vmatprep.subr.mxu0 %v501_v3  ;;  %215 = vmatprep.subr.mxu1 %v170_v37  ;;  %v279_v15 = vld [vmem:[%s832_s5 + $0x38] sm:$0xff]  ;;  %v294_v16 = vld [vmem:[%s832_s5 + $0xb0] sm:$0xff]  ;;  %v293_v18 = vld [vmem:[%s832_s5 + $0xa8] sm:$0xff] }
  0x18   :  { %151 = vperm.xlu1 %493, %v147_v36   ;;  %476 = vmatpush3.msra.mxu0 %v54_v34  ;;  %v278_v17 = vld [vmem:[%s832_s5 + $0x30] sm:$0xff]  ;;  %v277_v19 = vld [vmem:[%s832_s5 + $0x28] sm:$0xff]  ;;  %v292_v20 = vld [vmem:[%s832_s5 + $0xa0] sm:$0xff]  ;;  %v190_v34 = vshrl.u32 %v33_v54, 7 }
  0x19   :  { %477 = vmatprep.subr.mxu0 %v501_v3  ;;  %216 = vmatpush1.msra.mxu1 %v169_v39  ;;  %v276_v21 = vld [vmem:[%s832_s5 + $0x20] sm:$0xff]  ;;  %v291_v26 = vld [vmem:[%s832_s5 + $0x98] sm:$0xff]  ;;  %v290_v28 = vld [vmem:[%s832_s5 + $0x90] sm:$0xff] }
  0x1a   :  { %478 = vmatpush3.msra.mxu0 %v53_v38  ;;  %217 = vmatprep.subr.mxu1 %v168_v40  ;;  %v275_v27 = vld [vmem:[%s832_s5 + $0x18] sm:$0xff]  ;;  %v274_v29 = vld [vmem:[%s832_s5 + $0x10] sm:$0xff]  ;;  %v289_v30 = vld [vmem:[%s832_s5 + $0x88] sm:$0xff]  ;;  %v191_v35 = vsub.s32 0, %v190_v34  ;;  %v195_v37 = vsub.s32 1, %v190_v34 }
  0x1b   :  { %479 = vmatprep.subr.mxu0 %v501_v3  ;;  %218 = vmatpush1.msra.mxu1 %v167_v42  ;;  %v273_v31 = vld [vmem:[%s832_s5 + $0x8] sm:$0xff]  ;;  %v288_v32 = vld [vmem:[%s832_s5 + $0x80] sm:$0xff] }
  0x1c   :  { %480 = vmatpush3.msra.mxu0 %v52_v41  ;;  %219 = vmatprep.subr.mxu1 %v166_v43  ;;  %v272_v33 = vld [vmem:[%s832_s5] sm:$0xff] }
  0x1d   :  { %481 = vmatprep.subr.mxu0 %v501_v3  ;;  %220 = vmatpush1.msra.mxu1 %v165_v45  ;;  %v187_v36 = vld [vmem:[%s833_s4] sm:$0x3] }
  0x1e   :  { %482 = vmatpush3.msra.mxu0 %v51_v44  ;;  %221 = vmatprep.subr.mxu1 %v164_v46  ;;  %v192_v38 = vrot.slane %v187_v36, %v191_v35  ;;  %v196_v39 = vrot.slane %v187_v36, %v195_v37 }
  0x1f   :  { %483 = vmatprep.subr.mxu0 %v501_v3  ;;  %222 = vmatpush1.msra.mxu1 %v163_v48  ;;  %v285_v3 = vld [vmem:[%s832_s5 + $0x68] sm:$0xff]  ;;  %v400_v48 = vld [vmem:[%s834_s6] ss:$0 sm:$0xff] }
  0x20   :  { %484 = vmatpush3.msra.mxu0 %v50_v47  ;;  %223 = vmatprep.subr.mxu1 %v162_v49 }
  0x21   :  { %224 = vmatpush1.msra.mxu1 %v161_v50  ;;  %418 = vmatprep.subr.mxu0 %v303_v62 }
  0x22   :  { %225 = vmatprep.subr.mxu1 %v160_v51 }
  0x23   :  { %226 = vmatpush1.msra.mxu1 %v159_v52 }
  0x24   :  { %227 = vmatprep.subr.mxu1 %v158_v53 }
  0x25   :  { %228 = vmatpush1.msra.mxu1 %v157_v59 }
  0x26   :  { %229 = vmatprep.subr.mxu1 %v156_v60 }
  0x27   :  { %230 = vmatpush1.msra.mxu1 %v155_v61 }
  0x7d   :  { %v40_v55 = vpop.permute.xlu0 %39 }
  0x7e   :  { %vm41_vm2 = vcmp.ge.s32.totalorder %v708_v56, %v40_v55 }
  0x81   :  { %v44_v57 = vpop.permute.xlu0 %43 }
  0x82   :  { %vm45_vm3 = vcmp.lt.s32.totalorder %v708_v56, %v44_v57 }
  0x83   :  { %vm46_vm4 = vmand %vm41_vm2, %vm45_vm3 }
  0x84   :  { %486 = vmatmul.mubr.msk.f32.vlgmr.msra.gmra.mxu0 %vm46_vm4, %v503_v58 }
  0x85   :  { %419 = vmatpush3.msra.mxu0 %v287_v63 }
  0x86   :  { %420 = vmatprep.subr.mxu0 %v302_v0 }
  0x87   :  { %421 = vmatpush3.msra.mxu0 %v286_v1 }
  0x88   :  { %422 = vmatprep.subr.mxu0 %v301_v2 }
  0x89   :  { %423 = vmatpush3.msra.mxu0 %v285_v3 }
  0x8a   :  { %424 = vmatprep.subr.mxu0 %v300_v4 }
  0x8b   :  { %425 = vmatpush3.msra.mxu0 %v284_v5 }
  0x8c   :  { %426 = vmatprep.subr.mxu0 %v299_v6 }
  0x8d   :  { %427 = vmatpush3.msra.mxu0 %v283_v7 }
  0x8e   :  { %428 = vmatprep.subr.mxu0 %v298_v8 }
  0x8f   :  { %429 = vmatpush3.msra.mxu0 %v282_v9 }
  0x90   :  { %430 = vmatprep.subr.mxu0 %v297_v10 }
  0x91   :  { %431 = vmatpush3.msra.mxu0 %v281_v11 }
  0x92   :  { %432 = vmatprep.subr.mxu0 %v296_v12 }
  0x93   :  { %433 = vmatpush3.msra.mxu0 %v280_v13  ;;  %v152_v22 = vpop.permute.xlu1 %151 }
  0x94   :  { %434 = vmatprep.subr.mxu0 %v295_v14 }
  0x95   :  { %435 = vmatpush3.msra.mxu0 %v279_v15 }
  0x96   :  { %436 = vmatprep.subr.mxu0 %v294_v16 }
  0x97   :  { %437 = vmatpush3.msra.mxu0 %v278_v17 }
  0x98   :  { %438 = vmatprep.subr.mxu0 %v293_v18 }
  0x99   :  { %439 = vmatpush3.msra.mxu0 %v277_v19 }
  0x9a   :  { %440 = vmatprep.subr.mxu0 %v292_v20 }
  0x9b   :  { %441 = vmatpush3.msra.mxu0 %v276_v21 }
  0x9c   :  { %442 = vmatprep.subr.mxu0 %v291_v26 }
  0x9d   :  { %443 = vmatpush3.msra.mxu0 %v275_v27 }
  0x9e   :  { %444 = vmatprep.subr.mxu0 %v290_v28 }
  0x9f   :  { %445 = vmatpush3.msra.mxu0 %v274_v29 }
  0xa0   :  { %446 = vmatprep.subr.mxu0 %v289_v30 }
  0xa1   :  { %447 = vmatpush3.msra.mxu0 %v273_v31 }
  0xa2   :  { %448 = vmatprep.subr.mxu0 %v288_v32 }
  0xa3   :  { %449 = vmatpush3.msra.mxu0 %v272_v33 }
 0x144   :  { %v132_v23 = vpop.f32.mrf.mxu0 }
 0x145   :  { %v154_v24 = vmul.f32 %v152_v22, %v132_v23 }
 0x146   :  { %v487_v25 = vpop.f32.mrf.mxu0 }
 0x147   :  { %264 = vmatmul.mubr.f32.vlgmr.msra.gmra.mxu1 %v154_v24 }
 0x207   :  { %v265_v40 = vpop.f32.mrf.mxu1 }
 0x208   :  { %v266_v41 = vadd.f32 %v265_v40, %v192_v38 }
 0x209   :  { %v267_v42 = vpop.f32.mrf.mxu1 }
 0x20a   :  { %v268_v43 = vadd.f32 %v267_v42, %v196_v39  ;;  %v270_v45 = vmax.f32 %v266_v41, 0.0 }
 0x20c   :  { %v271_v44 = vmax.f32 %v268_v43, 0.0 }
 0x20e   :  { %375 = vmatprep.mubr.f32.mxu0 %v271_v44 }
 0x20f   :  { %376 = vmatmul.mubr.f32.vlgmr.msra.gmra.mxu0 %v270_v45 }
 0x2cf   :  { %v450_v46 = vpop.f32.mrf.mxu0 }
 0x2d1   :  { %v451_v47 = vpop.f32.mrf.mxu0 }
 0x2d2   :  { %v452_v49 = vadd.f32 %v451_v47, %v450_v46 }
 0x2d4   :  { %v378_v50 = vadd.f32 %v452_v49, %v400_v48 }
 0x2d6   :  { %v382_v51 = vsel %vm381_vm5, %v378_v50, -1e+30 }
 0x2d7   :  { %383 = vmax.xlane.f32.xlu1 %v382_v51 }
 0x360   :  { %v384_v52 = vpop.xlane.xlu1 %383 }
 0x361   :  { %v385_v53 = vsub.f32 %v382_v51, %v384_v52 }
 0x363   :  { %v386_v54 = vmul.f32 1.442695, %v385_v53 }
 0x365   :  { %496 = vpow2.f32 %v386_v54 }
 0x372   :  { %v497_v55 = vpop.eup %496 }
 0x373   :  { %388 = vadd.xlane.f32.xlu0 %v497_v55 }
 0x3fc   :  { %v389_v57 = vpop.xlane.xlu0 %388 }
 0x3fd   :  { %498 = vlog2.f32 %v389_v57 }
 0x40a   :  { %v499_v58 = vpop.eup %498 }
 0x40b   :  { %v391_v59 = vmul.f32 0.6931472, %v499_v58 }
 0x40d   :  { %v392_v60 = vsub.f32 %v385_v53, %v391_v59 }
 0x40f   :  { %393 = vst [vmem:[%s835_s7] sm:$0xff] %v392_v60 }

</bundles_post_ra>
